<compile_context>
chip_gen: v6e
topology: v6e:2x2x1
jax: 0.10.0
libtpu: 0.0.40
codegen_flags: <defaults>
</compile_context>

<pallas_src>
import math

import jax
import jax.numpy as jnp
from jax.experimental import pallas as pl
from jax.experimental.pallas import tpu as pltpu


# ---------------------------------------------------------------------------
# Shape computation — identical to the PyTorch module's forward().
# ---------------------------------------------------------------------------
def _flatten_shape(in_shape, start_dim, end_dim):
    ndim = len(in_shape)
    start, end = start_dim, end_dim
    if start < 0:
        start = ndim + start
    if end < 0:
        end = ndim + end
    shape = list(in_shape)
    to_remove = end - start
    for _ in range(to_remove):
        shape[start] *= shape.pop(start + 1)
    return tuple(shape)


# ---------------------------------------------------------------------------
# Optional physical-copy kernel (only when a copy is explicitly requested).
# ---------------------------------------------------------------------------
def _copy_kernel(x_ref, o_ref):
    # Identity copy of the current lane-dense tile.
    o_ref[...] = x_ref[...]


def _vmem_budget_bytes():
    """Per-generation VMEM-aware block size + explicit scoped-VMEM request."""
    try:
        phys = pltpu.get_tpu_info().vmem_capacity_bytes
    except Exception:  # pragma: no cover - conservative fallback (v7x per-TC)
        phys = 64 * 1024 * 1024
    # Explicit scoped-VMEM request: half of physical, capped at 64 MiB
    # (=> 64 MiB on v5e/v6e's 128 MiB physical, 32 MiB on v7x's 64 MiB).
    vmem_limit = int(min(phys // 2, 64 * 1024 * 1024))
    # 2 input + 2 output double-buffers per block, plus headroom, must fit.
    block_bytes = max(2 * 1024 * 1024, vmem_limit // 6)
    return block_bytes, vmem_limit


def _lane_dense_factorization(total, itemsize, block_bytes):
    """Factor `total` elements into a lane-dense (rows, cols) slab.

    cols is a multiple of 128 (wide unmasked stores); cols only grows while a
    sublane-aligned row block still fits in `block_bytes` and enough rows
    remain for pipelining / 2-TC sharding (avoids degenerate rows == 1).
    """
    if total <= 0 or total % 128 != 0:
        return None
    sub = max(8, 32 // itemsize)  # sublane packing: 8 / 16 / 32 rows per vreg
    cols = 128
    while (total % (cols * 2) == 0
           and (cols * 2) * itemsize * sub <= block_bytes
           and total // (cols * 2) >= 2 * sub):
        cols *= 2
    return total // cols, cols


def _pick_row_tile(rows, cols, itemsize, block_bytes):
    """Largest sublane-aligned row tile <= block_bytes that divides rows."""
    sub = max(8, 32 // itemsize)
    tm_max = (block_bytes // (cols * itemsize)) // sub * sub
    tm_max = max(sub, tm_max)
    if rows <= tm_max:
        return rows  # full row extent: always a legal block shape
    for tm in range(tm_max, sub - 1, -sub):
        if rows % tm == 0:
            return tm  # evenly dividing tile: no ragged masked tail block
    return tm_max  # fallback: ragged last block (masked, still correct)


def _flatten_copy_pallas(x, out_shape):
    total = int(math.prod(x.shape)) if x.ndim > 0 else 1
    itemsize = jnp.dtype(x.dtype).itemsize

    block_bytes, vmem_limit = _vmem_budget_bytes()
    fac = _lane_dense_factorization(total, itemsize, block_bytes)
    if fac is None:
        # Degenerate / non-128-multiple sizes: metadata-only reshape.
        return jnp.reshape(x, out_shape)
    rows, cols = fac
    tm = _pick_row_tile(rows, cols, itemsize, block_bytes)

    # Metadata-only reshape to the lane-dense slab (data is contiguous).
    x2d = jnp.reshape(x, (rows, cols))

    out2d = pl.pallas_call(
        _copy_kernel,
        out_shape=jax.ShapeDtypeStruct((rows, cols), x.dtype),
        grid_spec=pltpu.PrefetchScalarGridSpec(
            num_scalar_prefetch=0,
            grid=(pl.cdiv(rows, tm),),
            in_specs=[pl.BlockSpec((tm, cols), lambda i: (i, 0))],
            out_specs=pl.BlockSpec((tm, cols), lambda i: (i, 0)),
        ),
        compiler_params=pltpu.CompilerParams(
            # Row tiles are independent -> shard across TCs on v7x.
            dimension_semantics=("parallel",),
            vmem_limit_bytes=vmem_limit,
        ),
        cost_estimate=pl.CostEstimate(
            flops=0,
            transcendentals=0,
            bytes_accessed=2 * total * itemsize,
        ),
    )(x2d)

    # Final metadata-only reshape to the logical Flatten output shape.
    return jnp.reshape(out2d, out_shape)


def flatten_pallas(x, start_dim: int = 1, end_dim: int = -1, *, force_copy: bool = False):
    """Equivalent of Flatten(start_dim, end_dim)(x).

    Default: zero-copy metadata reshape (the review's dominant recommendation).
    force_copy=True: run the tuned Pallas identity-copy kernel instead (for
    cases where a physical copy into a fresh buffer is genuinely required).
    """
    out_shape = _flatten_shape(x.shape, start_dim, end_dim)
    if not force_copy:
        return jnp.reshape(x, out_shape)
    return _flatten_copy_pallas(x, out_shape)


if __name__ == "__main__":
    key = jax.random.PRNGKey(0)

    # Small NCHW input consistent with Flatten inside a ResNet head.
    x = jax.random.normal(key, (2, 4, 16, 16), dtype=jnp.float32)
    ref = jnp.reshape(x, (2, 4 * 16 * 16))

    # Default path: metadata-only reshape (no kernel, no HBM round trip).
    y = jax.block_until_ready(flatten_pallas(x, start_dim=1, end_dim=-1))
    assert y.shape == (2, 1024), y.shape
    assert y.dtype == x.dtype
    assert bool(jnp.array_equal(y, ref))

    # Explicit-copy path: exercises the Pallas kernel once on TPU.
    yc = jax.block_until_ready(flatten_pallas(x, start_dim=1, end_dim=-1, force_copy=True))
    assert yc.shape == (2, 1024)
    assert bool(jnp.array_equal(yc, ref))

    # Non-default flatten range: (2,4,16,16) -> (2, 64, 16), copy path.
    y2 = jax.block_until_ready(flatten_pallas(x, start_dim=1, end_dim=2, force_copy=True))
    assert y2.shape == (2, 64, 16)
    assert bool(jnp.array_equal(y2, jnp.reshape(x, (2, 64, 16))))

    # bf16 input exercising sublane-packing-aware tile selection on copy path.
    xb = jax.random.normal(key, (8, 16, 32, 32), dtype=jnp.bfloat16)
    yb = jax.block_until_ready(flatten_pallas(xb, force_copy=True))
    assert yb.shape == (8, 16 * 32 * 32)
    assert bool(jnp.array_equal(yb, jnp.reshape(xb, (8, 16 * 32 * 32))))

    # Element count not a multiple of 128 -> metadata-only fallback (even when
    # a copy is requested).
    xo = jax.random.normal(key, (2, 3, 5, 7), dtype=jnp.float32)
    yo = jax.block_until_ready(flatten_pallas(xo, force_copy=True))
    assert yo.shape == (2, 105)
    assert bool(jnp.array_equal(yo, jnp.reshape(xo, (2, 105))))

    print("KERNEL_OK")
</pallas_src>

<mosaic_0001>
module attributes {stable_mosaic.version = 11 : i64} {
  func.func @_copy_kernel(%arg0: i32, %arg1: memref<16x128xf32, #tpu.memory_space<vmem>>, %arg2: memref<16x128xf32, #tpu.memory_space<vmem>>) attributes {dimension_semantics = [#tpu.dimension_semantics<parallel>], iteration_bounds = array<i64: 1>, scalar_prefetch = 0 : i64, scratch_operands = 0 : i64, tpu.core_type = #tpu.core_type<tc>, window_params = [{transform_indices = @transform_0, window_bounds = array<i64: 16, 128>}, {transform_indices = @transform_1, window_bounds = array<i64: 16, 128>}]} {
    %c0 = arith.constant 0 : index
    %c0_0 = arith.constant 0 : index
    %0 = vector.load %arg1[%c0, %c0_0] : memref<16x128xf32, #tpu.memory_space<vmem>>, vector<16x128xf32>
    %c0_1 = arith.constant 0 : index
    %c0_2 = arith.constant 0 : index
    %1 = vector.load %arg2[%c0_1, %c0_2] : memref<16x128xf32, #tpu.memory_space<vmem>>, vector<16x128xf32>
    tpu.vector_store %arg2[%c0_1, %c0_2], %0 {strides = array<i32>} : memref<16x128xf32, #tpu.memory_space<vmem>>, vector<16x128xf32>,
    return
  }
  func.func @transform_0(%arg0: i32) -> (i32, i32) {
    %c0_i32 = arith.constant 0 : i32
    %c0_i32_0 = arith.constant 0 : i32
    return %arg0, %c0_i32 : i32, i32
  }
  func.func @transform_1(%arg0: i32) -> (i32, i32) {
    %c0_i32 = arith.constant 0 : i32
    %c0_i32_0 = arith.constant 0 : i32
    return %arg0, %c0_i32 : i32, i32
  }
}

</mosaic_0001>

<bundles_post_ra>
// kernel: tpu_custom_call.1
= control target key start
LH: loop header
LB: loop body
LE: loop exit
PB: predicated region body
PF: predicated region fallthrough
CT: control target
= control target key end

     0   :  { %6 = vsyncpa [#allocation3], 0  ;;  %s112_s0 = inlined_call_operand.hbm [shape: f32[16,128], index: 0, kind: input, shape index: {}]   ;;  %s113_s1 = inlined_call_operand.hbm [shape: f32[16,128], index: 1, kind: output, shape index: {}]  }
   0x1   :  { %7 = vsyncpa [#allocation4], 0  ;;  %s92_s6 = smov [#allocation2]  }
   0x2   :  { %s13_s7 = sshll.u32 %s92_s6, 4  ;;  %s14_s7 = int_to_ptr.vmem [resolvable:$true] %s13_s7 }
   0x3   :  { %s56_s8 = scalar_lea.vmem %s14_s7, 256  ;;  %p61_p1 = scmp.lt.s32.totalorder %s14_s7, %s14_s7 }
   0x4   :  { %p57_p0 = scmp.ne.s32.totalorder %s14_s7, %s56_s8  ;;  %p62_p2 = scmp.lt.s32.totalorder %s56_s8, %s56_s8 }
   0x6   :  { %p63_p3 = por %p62_p2, %p61_p1 }
   0x8   :  { %p64_p4 = pnand %p63_p3, %p57_p0 }
   0xa   :  { %67 = shalt.err (!%p64_p4)
}
   0xb   :  { %s93_s9 = smov 128   ;;  %s94_s10 = smov 8  }
   0xc   :  { %19 = dma.hbm_to_vmem [thread:$0]  %s112_s0, 256, %s14_s7, [#allocation3], %s93_s9, %s93_s9, %s94_s10  }
   0xd   :  { %88 = dma.done.wait [#allocation3], 256  }
   0xe   :  { %89 = vsyncadd [#allocation3], 4294967040  ;;  %s95_s13 = smov [#allocation5]   ;;  %v23_v0 = vld [vmem:[#allocation2] sm:$0xff]  ;;  %v24_v1 = vld [vmem:[#allocation2 + $0x8] sm:$0xff] }
   0xf   :  { %s32_s14 = sshll.u32 %s95_s13, 4  ;;  %25 = vst [vmem:[#allocation5] sm:$0xff] %v23_v0  ;;  %26 = vst [vmem:[#allocation5 + $0x8] sm:$0xff] %v24_v1  ;;  %s33_s14 = int_to_ptr.vmem [resolvable:$true] %s32_s14 }
  0x10   :  { %s68_s15 = scalar_lea.vmem %s33_s14, 256  ;;  %p73_p6 = scmp.lt.s32.totalorder %s33_s14, %s33_s14 }
  0x11   :  { %p69_p5 = scmp.ne.s32.totalorder %s33_s14, %s68_s15  ;;  %p74_p7 = scmp.lt.s32.totalorder %s68_s15, %s68_s15 }
  0x13   :  { %p75_p8 = por %p74_p7, %p73_p6 }
  0x15   :  { %p76_p9 = pnand %p75_p8, %p69_p5 }
  0x17   :  { %79 = shalt.err (!%p76_p9)
}
  0x18   :  { %38 = dma.vmem_to_hbm [thread:$0]  %s33_s14, 256, %s113_s1, [#allocation4], %s93_s9, %s93_s9, %s94_s10  }
  0x19   :  { %90 = dma.done.wait [#allocation4], 256  }
  0x1a   :  { %91 = vsyncadd [#allocation4], 4294967040 }
  0x1b   :  { %42 = vsyncpa [#allocation3], 1 }
  0x1c   :  { %43 = vsyncpa [#allocation4], 1 }

</bundles_post_ra>
